<compile_context>
chip_gen: v7x
topology: tpu7x:2x2x1
jax: 0.10.0
libtpu: 0.0.40
codegen_flags: <defaults>
</compile_context>

<pallas_src>
import functools

import jax
import jax.numpy as jnp
from jax import lax
from jax.experimental import pallas as pl
from jax.experimental.pallas import tpu as pltpu


# ----------------------------------------------------------------------------
# Pallas kernel: tiled GEMM (bf16 in, f32 out-resident accumulation)
#                + per-output-channel shift + ReLU in the K-last finalize
# ----------------------------------------------------------------------------
def _gemm_bn_relu_kernel(w_ref, p_ref, shift_ref, o_ref):
    k = pl.program_id(2)

    @pl.when(k == 0)
    def _():
        o_ref[...] = jnp.zeros_like(o_ref)

    # (tco, tk) @ (tk, tm) on the MXU; accumulate into the resident f32 output.
    o_ref[...] += jnp.dot(w_ref[...], p_ref[...],
                          preferred_element_type=jnp.float32)

    @pl.when(k == pl.num_programs(2) - 1)
    def _():
        # Conv bias + BatchNorm(eval) shift (scale already folded into W) + ReLU.
        o_ref[...] = jnp.maximum(o_ref[...] + shift_ref[...], 0.0)


# ----------------------------------------------------------------------------
# Helpers
# ----------------------------------------------------------------------------
def _round_up(x, m):
    return ((x + m - 1) // m) * m


def _pick_dim(size, quantum, max_tile):
    """Pad `size` to a multiple of `quantum` and pick a tile (multiple of
    `quantum`, <= max_tile) that divides the padded size.  Prefers the largest
    tile whose padding waste is small; padding never blows up to ~2x."""
    padded = _round_up(size, quantum)
    if padded <= max_tile:
        return padded, padded                       # whole dim in a single block
    best_pad, best_t = None, None
    for t in range(max_tile, quantum - 1, -quantum):
        pad = _round_up(size, t)
        if pad - size <= max(quantum, size // 16):  # <= ~6% waste -> take it
            return pad, t
        if best_pad is None or pad < best_pad:
            best_pad, best_t = pad, t
    return best_pad, best_t


def _im2col_km(x, kh, kw, stride, padding):
    """x: [N, C, H, W] (already bf16) -> patches [K, M] with
    K = C*KH*KW (C-major, then kh, kw -- matches PyTorch OIHW weight flatten)
    and M = N*OH*OW."""
    n, c, h, w = x.shape
    if padding > 0:
        x = jnp.pad(x, ((0, 0), (0, 0), (padding, padding), (padding, padding)))
    hp = h + 2 * padding
    wp = w + 2 * padding
    oh = (hp - kh) // stride + 1
    ow = (wp - kw) // stride + 1
    cols = []
    for i in range(kh):
        for j in range(kw):
            sl = x[:, :, i: i + (oh - 1) * stride + 1: stride,
                         j: j + (ow - 1) * stride + 1: stride]   # [N, C, OH, OW]
            cols.append(sl)
    pat = jnp.stack(cols, axis=0)                 # [KH*KW, N, C, OH, OW]
    pat = jnp.transpose(pat, (2, 0, 1, 3, 4))     # [C, KH*KW, N, OH, OW]
    pat = pat.reshape(c * kh * kw, n * oh * ow)   # [K, M]
    return pat, oh, ow


# ----------------------------------------------------------------------------
# Wrapper: Conv2d -> BN(eval) -> ReLU.  NCHW in / NCHW out (PyTorch semantics).
# ----------------------------------------------------------------------------
@functools.partial(jax.jit, static_argnames=("stride", "padding"))
def conv2d_norm_relu(x, weight, bias, gamma, beta, running_mean, running_var,
                     stride=1, padding=0, eps=1e-5):
    """x: [N, Cin, H, W]; weight: [Cout, Cin, KH, KW] (PyTorch layouts)."""
    n, cin, h, w = x.shape
    cout, _, kh, kw = weight.shape

    # --- fold conv bias + BatchNorm(eval) into per-channel scale/shift (f32) ---
    inv_std = lax.rsqrt(running_var.astype(jnp.float32) + eps)
    scale = gamma.astype(jnp.float32) * inv_std                           # [Cout]
    shift = (beta.astype(jnp.float32)
             + (bias.astype(jnp.float32) - running_mean.astype(jnp.float32)) * scale)

    # --- im2col in bf16 (single bf16 write of the duplicated intermediate) ---
    patches, oh, ow = _im2col_km(x.astype(jnp.bfloat16), kh, kw, stride, padding)
    K, M = patches.shape                                                  # [K, M]

    # Scale folded into the weight rows in f32, then one cast to bf16.
    w_mat = (weight.reshape(cout, K).astype(jnp.float32)
             * scale[:, None]).astype(jnp.bfloat16)                      # [Cout, K]

    # --- padding + tile selection -------------------------------------------
    TCO_MAX, TM_MAX, TK_MAX = 512, 1024, 1024     # ~<=12 MiB double-buffered

    Np, tco = _pick_dim(cout, 16, TCO_MAX)        # sublane dim of W / output
    Mp, tm = _pick_dim(M, 128, TM_MAX)            # lane dim of patches / output
    if _round_up(K, 16) <= TK_MAX:                # small K: one full-dim block
        Kp = _round_up(K, 16)
        tk = Kp
    else:
        Kp, tk = _pick_dim(K, 128, TK_MAX)

    # Keep both TensorCores busy on v7x when the problem fits one (i, j) block.
    if (Np // tco) * (Mp // tm) == 1 and tm >= 256 and tm % 256 == 0:
        tm //= 2

    w_p = jnp.pad(w_mat, ((0, Np - cout), (0, Kp - K)))
    p_p = jnp.pad(patches, ((0, Kp - K), (0, Mp - M)))
    shift_p = jnp.pad(shift, (0, Np - cout)).reshape(Np, 1)

    grid = (Np // tco, Mp // tm, Kp // tk)

    cost = pl.CostEstimate(
        flops=2 * Np * Kp * Mp,
        transcendentals=0,
        bytes_accessed=((Np * Kp * 2) * (Mp // tm)       # weight re-reads
                        + (Kp * Mp * 2) * (Np // tco)    # patch re-reads
                        + Np * Mp * 4                    # output writeback
                        + Np * 4),                       # shift
    )

    out_mat = pl.pallas_call(
        _gemm_bn_relu_kernel,
        out_shape=jax.ShapeDtypeStruct((Np, Mp), jnp.float32),
        grid_spec=pltpu.PrefetchScalarGridSpec(
            num_scalar_prefetch=0,
            grid=grid,
            in_specs=[
                pl.BlockSpec((tco, tk), lambda i, j, k: (i, k)),   # scaled weights
                pl.BlockSpec((tk, tm), lambda i, j, k: (k, j)),    # im2col patches
                pl.BlockSpec((tco, 1), lambda i, j, k: (i, 0)),    # per-channel shift
            ],
            out_specs=pl.BlockSpec((tco, tm), lambda i, j, k: (i, j)),
        ),
        compiler_params=pltpu.CompilerParams(
            dimension_semantics=("parallel", "parallel", "arbitrary"),
            vmem_limit_bytes=40 * 1024 * 1024,
        ),
        cost_estimate=cost,
    )(w_p, p_p, shift_p)

    # Slice off padding, back to NCHW.
    out = out_mat[:cout, :M].reshape(cout, n, oh, ow).transpose(1, 0, 2, 3)
    return out


# ----------------------------------------------------------------------------
# Pure-JAX reference (f32) for correctness check
# ----------------------------------------------------------------------------
def _reference(x, weight, bias, gamma, beta, running_mean, running_var,
               stride, padding, eps=1e-5):
    conv = lax.conv_general_dilated(
        x, weight, window_strides=(stride, stride),
        padding=[(padding, padding), (padding, padding)],
        dimension_numbers=("NCHW", "OIHW", "NCHW"))
    conv = conv + bias[None, :, None, None]
    inv_std = 1.0 / jnp.sqrt(running_var + eps)
    bn = ((conv - running_mean[None, :, None, None])
          * (gamma * inv_std)[None, :, None, None] + beta[None, :, None, None])
    return jnp.maximum(bn, 0.0)


if __name__ == "__main__":
    # Module config (Conv2dNormRelu defaults): kernel_size=3, stride=1, padding=0, bias=True
    in_ch, out_ch, ksize, stride, padding = 4, 8, 3, 1, 0
    batch, spatial = 2, 16

    key = jax.random.PRNGKey(0)
    kx, kw_, kb, kg, kbt, km, kv = jax.random.split(key, 7)

    x = jax.random.normal(kx, (batch, in_ch, spatial, spatial), dtype=jnp.float32)
    weight = jax.random.normal(kw_, (out_ch, in_ch, ksize, ksize), dtype=jnp.float32) * 0.1
    bias = jax.random.normal(kb, (out_ch,), dtype=jnp.float32) * 0.1
    gamma = 1.0 + 0.1 * jax.random.normal(kg, (out_ch,), dtype=jnp.float32)
    beta = 0.1 * jax.random.normal(kbt, (out_ch,), dtype=jnp.float32)
    running_mean = 0.1 * jax.random.normal(km, (out_ch,), dtype=jnp.float32)
    running_var = jnp.abs(jax.random.normal(kv, (out_ch,), dtype=jnp.float32)) + 0.5

    out = conv2d_norm_relu(x, weight, bias, gamma, beta, running_mean, running_var,
                           stride=stride, padding=padding)
    out = jax.block_until_ready(out)

    ref = _reference(x, weight, bias, gamma, beta, running_mean, running_var,
                     stride, padding)
    assert out.shape == (batch, out_ch, spatial - ksize + 1, spatial - ksize + 1)
    # bf16 MXU inputs with f32 accumulation -> relaxed tolerance vs f32 reference.
    assert jnp.allclose(out, ref, atol=5e-2, rtol=5e-2), "mismatch vs reference conv"

    print("KERNEL_OK")
</pallas_src>

<mosaic_0001>
module attributes {stable_mosaic.version = 11 : i64} {
  func.func @_gemm_bn_relu_kernel(%arg0: i32, %arg1: i32, %arg2: i32, %arg3: memref<16x48xbf16, #tpu.memory_space<vmem>>, %arg4: memref<48x256xbf16, #tpu.memory_space<vmem>>, %arg5: memref<16x1xf32, #tpu.memory_space<vmem>>, %arg6: memref<16x256xf32, #tpu.memory_space<vmem>>) attributes {dimension_semantics = [#tpu.dimension_semantics<parallel>, #tpu.dimension_semantics<parallel>, #tpu.dimension_semantics<arbitrary>], iteration_bounds = array<i64: 1, 2, 1>, scalar_prefetch = 0 : i64, scratch_operands = 0 : i64, tpu.core_type = #tpu.core_type<tc>, window_params = [{transform_indices = @transform_0, window_bounds = array<i64: 16, 48>}, {transform_indices = @transform_1, window_bounds = array<i64: 48, 256>}, {transform_indices = @transform_2, window_bounds = array<i64: 16, 1>}, {transform_indices = @transform_3, window_bounds = array<i64: 16, 256>}]} {
    %c0_i32 = arith.constant 0 : i32
    %0 = arith.cmpi eq, %arg2, %c0_i32 : i32
    %1 = arith.extui %0 : i1 to i32
    %c0_i32_0 = arith.constant 0 : i32
    %2 = arith.cmpi ne, %1, %c0_i32_0 : i32
    scf.if %2 {
      %cst_10 = arith.constant 0.000000e+00 : f32
      %12 = vector.broadcast %cst_10 : f32 to vector<16x256xf32>
      %c0_11 = arith.constant 0 : index
      %c0_12 = arith.constant 0 : index
      %13 = vector.load %arg6[%c0_11, %c0_12] : memref<16x256xf32, #tpu.memory_space<vmem>>, vector<16x256xf32>
      tpu.vector_store %arg6[%c0_11, %c0_12], %12 {strides = array<i32>} : memref<16x256xf32, #tpu.memory_space<vmem>>, vector<16x256xf32>,
    } else {
    }
    %c0 = arith.constant 0 : index
    %c0_1 = arith.constant 0 : index
    %3 = vector.load %arg6[%c0, %c0_1] : memref<16x256xf32, #tpu.memory_space<vmem>>, vector<16x256xf32>
    %c0_2 = arith.constant 0 : index
    %c0_3 = arith.constant 0 : index
    %4 = vector.load %arg3[%c0_2, %c0_3] : memref<16x48xbf16, #tpu.memory_space<vmem>>, vector<16x48xbf16>
    %c0_4 = arith.constant 0 : index
    %c0_5 = arith.constant 0 : index
    %5 = vector.load %arg4[%c0_4, %c0_5] : memref<48x256xbf16, #tpu.memory_space<vmem>>, vector<48x256xbf16>
    %cst = arith.constant dense<0.000000e+00> : vector<16x256xf32>
    %6 = tpu.matmul %4, %5, %cst {dimension_numbers = #tpu.dot_dimension_numbers<[1], [0], [0], [1], [0, 0, 1, 1], [], []>} : vector<16x48xbf16>, vector<48x256xbf16>, vector<16x256xf32> -> vector<16x256xf32>
    %7 = arith.addf %3, %6 : vector<16x256xf32>
    %c0_6 = arith.constant 0 : index
    %c0_7 = arith.constant 0 : index
    %8 = vector.load %arg6[%c0_6, %c0_7] : memref<16x256xf32, #tpu.memory_space<vmem>>, vector<16x256xf32>
    tpu.vector_store %arg6[%c0_6, %c0_7], %7 {strides = array<i32>} : memref<16x256xf32, #tpu.memory_space<vmem>>, vector<16x256xf32>,
    %c0_i32_8 = arith.constant 0 : i32
    %9 = arith.cmpi eq, %arg2, %c0_i32_8 : i32
    %10 = arith.extui %9 : i1 to i32
    %c0_i32_9 = arith.constant 0 : i32
    %11 = arith.cmpi ne, %10, %c0_i32_9 : i32
    scf.if %11 {
      %c0_10 = arith.constant 0 : index
      %c0_11 = arith.constant 0 : index
      %12 = vector.load %arg6[%c0_10, %c0_11] : memref<16x256xf32, #tpu.memory_space<vmem>>, vector<16x256xf32>
      %c0_12 = arith.constant 0 : index
      %c0_13 = arith.constant 0 : index
      %13 = vector.load %arg5[%c0_12, %c0_13] : memref<16x1xf32, #tpu.memory_space<vmem>>, vector<16x1xf32>
      %14 = vector.broadcast %13 : vector<16x1xf32> to vector<16x256xf32>
      %15 = arith.addf %12, %14 : vector<16x256xf32>
      %cst_14 = arith.constant 0.000000e+00 : f32
      %16 = vector.broadcast %cst_14 : f32 to vector<16x256xf32>
      %17 = arith.maximumf %15, %16 : vector<16x256xf32>
      %c0_15 = arith.constant 0 : index
      %c0_16 = arith.constant 0 : index
      %18 = vector.load %arg6[%c0_15, %c0_16] : memref<16x256xf32, #tpu.memory_space<vmem>>, vector<16x256xf32>
      tpu.vector_store %arg6[%c0_15, %c0_16], %17 {strides = array<i32>} : memref<16x256xf32, #tpu.memory_space<vmem>>, vector<16x256xf32>,
    } else {
    }
    return
  }
  func.func @transform_0(%arg0: i32, %arg1: i32, %arg2: i32) -> (i32, i32) {
    %c0_i32 = arith.constant 0 : i32
    return %arg0, %arg2 : i32, i32
  }
  func.func @transform_1(%arg0: i32, %arg1: i32, %arg2: i32) -> (i32, i32) {
    %c0_i32 = arith.constant 0 : i32
    return %arg2, %arg1 : i32, i32
  }
  func.func @transform_2(%arg0: i32, %arg1: i32, %arg2: i32) -> (i32, i32) {
    %c0_i32 = arith.constant 0 : i32
    %c0_i32_0 = arith.constant 0 : i32
    return %arg0, %c0_i32 : i32, i32
  }
  func.func @transform_3(%arg0: i32, %arg1: i32, %arg2: i32) -> (i32, i32) {
    %c0_i32 = arith.constant 0 : i32
    return %arg0, %arg1 : i32, i32
  }
}

</mosaic_0001>

<bundles_post_ra>
// kernel: conv2d_norm_relu.1
= control target key start
LH: loop header
LB: loop body
LE: loop exit
PB: predicated region body
PF: predicated region fallthrough
CT: control target
= control target key end

     0   :  { %s731_s12 = smov 0   ;;  %s733_s13 = smov 0   ;;  %s812_s0 = inlined_call_operand.vmem [shape: bf16[16,48], index: 0, kind: input, shape index: {}]   ;;  %s813_s1 = inlined_call_operand.vmem [shape: bf16[48,512], index: 1, kind: input, shape index: {}]   ;;  %s814_s2 = inlined_call_operand.vmem [shape: f32[16,1], index: 2, kind: input, shape index: {}]   ;;  %s815_s3 = inlined_call_operand.vmem [shape: f32[16,512], index: 3, kind: output, shape index: {}]  }
   0x1   :  { %s735_s14 = smov 0   ;;  %s737_s15 = smov 0  }
   0x2   :  { %s739_s16 = smov 0  }
   0x3 LB: > { %s28_s17 = sadd.s32 1, %s704_s15  ;;  %s590_s18 = sadd.s32 4294967295, %s708_s16   ;;  %s708_s16 = sphi %s739_s16, %s13_s16   ;;  %s704_s15 = sphi %s737_s15, %s820_s15   ;;  %s700_s14 = sphi %s735_s14, %s819_s14   ;;  %s696_s13 = sphi %s733_s13, %s818_s13   ;;  %s692_s12 = sphi %s731_s12, %s817_s12  }
   0x4   : > { %p30_p0 = scmp.ge.s32.totalorder %s28_s17, 2  ;;  %p76_p1 = scmp.ne.s32.totalorder %s696_s13, %s692_s12 }
   0x5   : > { %p77_p2 = scmp.eq.s32.totalorder %s708_s16, 0  ;;  %p134_p4 = scmp.eq.s32.totalorder %s590_s18, 1 }
   0x6   : > { %s822_s17 = smov (%p30_p0, %s28_s17), 0  ;;  %s69_s20 = sadd.s32 1, %s696_s13 }
   0x7   : > { %p78_p3 = por %p77_p2, %p76_p1  ;;  %s65_s19 = ssub.s32 %s704_s15, %s822_s17 }
   0x8   : > { %p67_p5 = scmp.eq.s32.totalorder %s65_s19, 0  ;;  %p766_p6 = por %p134_p4, %p76_p1 }
   0x9   : > { %p595_p7 = scmp.ge.s32.totalorder %s708_s16, 2 }
   0xa   : > { %s771_s22 = scalar_select %p67_p5, %s696_s13, %s69_s20  }
   0xb   : > { %177 = sbr.rel (%p595_p7) target bundleno = 25 (0x19), region = 24 }
  0x12   : > { %180 = sbr.rel (!%p78_p3) target bundleno = 25 (0x19), region = 28  ;;  %s182_s23 = sand.u32 (%p78_p3), 1, %s696_s13  }
  0x13   : > { %s613_s24 = sshll.u32 (%p78_p3), %s704_s15, 3  ;;  %s615_s25 = smul.u32 (%p78_p3), 48, %s182_s23 }
  0x14   : > { %s190_s28 = scalar_lea.vmem (%p78_p3), %s813_s1, %s613_s24 }
  0x15   : > { %v228_v0 = vld [vmem:[%s190_s28] sm:$0xff] (%p78_p3)  ;;  %v230_v1 = vld [vmem:[%s190_s28 + $0x10] sm:$0xff] (%p78_p3)  ;;  %s184_s29 = scalar_lea.vmem (%p78_p3), [#allocation2], %s615_s25 }
  0x16   : > { %v232_v2 = vld [vmem:[%s190_s28 + $0x20] sm:$0xff] (%p78_p3)  ;;  %v234_v3 = vld [vmem:[%s190_s28 + $0x30] sm:$0xff] (%p78_p3)  ;;  %229 = vst [vmem:[%s184_s29] sm:$0xff] (%p78_p3), %v228_v0  ;;  %231 = vst [vmem:[%s184_s29 + $0x8] sm:$0xff] (%p78_p3), %v230_v1 }
  0x17   : > { %v236_v4 = vld [vmem:[%s190_s28 + $0x40] sm:$0xff] (%p78_p3)  ;;  %v238_v5 = vld [vmem:[%s190_s28 + $0x50] sm:$0xff] (%p78_p3)  ;;  %233 = vst [vmem:[%s184_s29 + $0x10] sm:$0xff] (%p78_p3), %v232_v2  ;;  %235 = vst [vmem:[%s184_s29 + $0x18] sm:$0xff] (%p78_p3), %v234_v3 }
  0x18   : > { %237 = vst [vmem:[%s184_s29 + $0x20] sm:$0xff] (%p78_p3), %v236_v4  ;;  %239 = vst [vmem:[%s184_s29 + $0x28] sm:$0xff] (%p78_p3), %v238_v5 }
  0x19 PF: > { %p598_p8 = scmp.ge.s32.totalorder %s708_s16, 1  ;;  %p244_p9 = scmp.lt.s32.totalorder %s708_s16, 3 }
  0x1b   : > { %p245_p10 = pnand %p598_p8, %p244_p9 }
  0x1c   : > { %s251_s30 = sand.u32 (!%p245_p10), 1, %s692_s12   ;;  %v710_v6 = vmov (!%p245_p10), 0   ;;  %v423_v7 = vld [vmem:[%s814_s2] sm:$0xff] (!%p245_p10)  ;;  %v424_v8 = vld [vmem:[%s814_s2 + $0x8] sm:$0xff] (!%p245_p10)  ;;  %vm361_vm0 = vcmask (!%p245_p10), 392192  }
  0x1d   : > { %248 = sbr.rel (%p245_p10) target bundleno = 274 (0x112), region = 66  ;;  %397 = vmatprep.mubr.bf16.mxu0 (!%p245_p10), %v710_v6  ;;  %659 = vset.pattern.permute.xlu0 (!%p245_p10), %v710_v6  ;;  %v669_v15 = vld [vmem:[%s812_s0] sm:$0xff] (!%p245_p10)   ;;  %s599_s12 = sshll.u32 (!%p245_p10), %s251_s30, 5 }
  0x1e   : > { %s616_s4 = smul.u32 (!%p245_p10), 48, %s251_s30  ;;  %427 = vperm.xlu0 (!%p245_p10), %659, %v423_v7   ;;  %s285_s18 = scalar_lea.vmem (!%p245_p10), [#allocation3], %s599_s12 }
  0x20   : > { %s253_s9 = scalar_lea.vmem (!%p245_p10), [#allocation2], %s616_s4 }
  0x21   : > { %v660_v9 = vld [vmem:[%s253_s9 + $0x4] ss:$8 sps:$4 sm:$0xff] (!%p245_p10)   ;;  %v662_v10 = vld [vmem:[%s253_s9] ss:$8 sps:$4 sm:$0xff] (!%p245_p10)   ;;  %v663_v11 = vld [vmem:[%s253_s9 + $0x14] ss:$8 sps:$4 sm:$0xff] (!%p245_p10)  }
  0x22   : > { %365 = vmatprep.subr.bf16.mxu0 (!%p245_p10), %v660_v9  ;;  %432 = vperm.xlu0 (!%p245_p10), %659, %v424_v8   ;;  %v665_v12 = vld [vmem:[%s253_s9 + $0x10] ss:$8 sps:$4 sm:$0xff] (!%p245_p10)   ;;  %v666_v13 = vld [vmem:[%s253_s9 + $0x24] ss:$8 sps:$4 sm:$0xff] (!%p245_p10)   ;;  %v668_v14 = vld [vmem:[%s253_s9 + $0x20] ss:$8 sps:$4 sm:$0xff] (!%p245_p10)  }
  0x23   : > { %366 = vmatpush1.bf16.msra.mxu0 (!%p245_p10), %v662_v10 }
  0x24   : > { %367 = vmatprep.subr.bf16.mxu0 %v663_v11  ;;  %s614_s19 = sshll.u32 (%p766_p6), %s700_s14, 4 }
  0x25   : > { %s459_s24 = scalar_lea.vmem (%p766_p6), %s815_s3, %s614_s19 }
  0x27   : > { %368 = vmatpush1.bf16.msra.mxu0 %v665_v12 }
  0x28   : > { %369 = vmatprep.subr.bf16.mxu0 %v666_v13 }
  0x2b   : > { %370 = vmatpush1.bf16.msra.mxu0 %v668_v14 }
  0x2e   : > { %607 = vmatmul.mubr.msk.bf16.vlgmr.msra.gmra.mrb[0].mxu0 %vm361_vm0, %v669_v15 }
  0x9d   : > { %v428_v16 = vpop.permute.xlu0 %427 }
  0xa1   : > { %v433_v23 = vpop.permute.xlu0 %432 }
 0x101   : > { %v399_v17 = vpop.f32.mrb[0].mxu0 }
 0x102   : > { %v401_v18 = vpop.f32.mrb[1].mxu0  ;;  %v435_v21 = vadd.f32 %v428_v16, %v399_v17 }
 0x103   : > { %v403_v19 = vpop.f32.mrb[2].mxu0  ;;  %v436_v22 = vadd.f32 %v428_v16, %v401_v18  ;;  %453 = sbr.rel (!%p766_p6) target bundleno = 274 (0x112), region = 82 }
 0x104   : > { %v405_v20 = vpop.f32.mrb[3].mxu0  ;;  %v439_v24 = vmax.f32 %v435_v21, 0.0  ;;  %v437_v25 = vadd.f32 %v433_v23, %v403_v19 }
 0x105   : > { %v440_v26 = vmax.f32 %v436_v22, 0.0  ;;  %v438_v27 = vadd.f32 %v433_v23, %v405_v20 }
 0x106   : > { %443 = vst [vmem:[%s285_s18] sm:$0xff] %v439_v24  ;;  %v441_v28 = vmax.f32 %v437_v25, 0.0 }
 0x107   : > { %444 = vst [vmem:[%s285_s18 + $0x8] sm:$0xff] %v440_v26  ;;  %v442_v29 = vmax.f32 %v438_v27, 0.0 }
 0x108   : > { %445 = vst [vmem:[%s285_s18 + $0x10] sm:$0xff] %v441_v28 }
 0x109   : > { %446 = vst [vmem:[%s285_s18 + $0x18] sm:$0xff] %v442_v29 }
 0x10d   : > { %v472_v30 = vld [vmem:[%s285_s18] sm:$0xff] }
 0x10e   : > { %v474_v31 = vld [vmem:[%s285_s18 + $0x8] sm:$0xff]  ;;  %473 = vst [vmem:[%s459_s24] sm:$0xff] %v472_v30 }
 0x10f   : > { %v476_v32 = vld [vmem:[%s285_s18 + $0x10] sm:$0xff]  ;;  %475 = vst [vmem:[%s459_s24 + $0x8] sm:$0xff] %v474_v31 }
 0x110   : > { %v478_v33 = vld [vmem:[%s285_s18 + $0x18] sm:$0xff]  ;;  %477 = vst [vmem:[%s459_s24 + $0x20] sm:$0xff] %v476_v32 }
 0x111   : > { %479 = vst [vmem:[%s459_s24 + $0x28] sm:$0xff] %v478_v33 }
 0x112 PF: > { %s13_s16 = sadd.s32 1, %s708_s16   ;;  %s817_s12 = smov %s696_s13 }
 0x113   : > { %p10_p11 = scmp.ge.s32.totalorder %s13_s16, 4   ;;  %s818_s13 = smov %s771_s22 }
 0x114   : > { %s819_s14 = smov %s704_s15  ;;  %s820_s15 = smov %s822_s17 }
 0x115   :  { %12 = sbr.rel (!%p10_p11) target bundleno = 3 (0x3), region = 142 }

</bundles_post_ra>
